<compile_context>
chip_gen: v7x
topology: tpu7x:2x2x1
jax: 0.10.0
libtpu: 0.0.40
codegen_flags: <defaults>
</compile_context>

<pallas_src>
import functools
import math

import numpy as np
import jax
import jax.numpy as jnp
from jax.experimental import pallas as pl
from jax.experimental.pallas import tpu as pltpu

P_NUM = 8
KH = KW = 5  # generated PDO kernels are 5x5


def _round_up(x, m):
    return (x + m - 1) // m * m


def _cdiv(a, b):
    return (a + b - 1) // b


def _pdo_fused_kernel(x_ref, w_ref, o_ref, xcol_ref, *, cin, wp, tm):
    """One (batch, flat-pixel tile) per grid step.

    x_ref   : (1, 1, Cin, WIN) f32 halo'd flat window of the zero-padded input
    w_ref   : (Cfp, Kp)        f32 flattened PDO filter bank (K = 25*Cin)
    o_ref   : (1, Cfp, TM)     output tile, channel-major, lane dim TM (%128==0)
    xcol_ref: (Kp, TM)         f32 VMEM scratch -- in-kernel im2col operand
    """
    # Zero the scratch so the K-pad rows never feed stale/NaN VMEM to the MXU.
    # (Done every step: with "parallel" grid axes on v7x each core has its own
    #  scratch, so a program_id==0 one-shot init would be wrong.)
    xcol_ref[...] = jnp.zeros_like(xcol_ref)

    # In-kernel im2col: each 5x5 tap is a static lane-offset slice of the flat
    # window (the padded-image row stride Wp is folded into the flat index).
    for ky in range(KH):
        for kx in range(KW):
            t = ky * KW + kx
            j0 = ky * wp + kx
            xcol_ref[t * cin:(t + 1) * cin, :] = x_ref[0, 0, :, j0:j0 + tm]

    # Single K-folded MXU GEMM (f32 accumulation); one lane-dense store.
    o_ref[0] = jnp.dot(w_ref[...], xcol_ref[...],
                       preferred_element_type=jnp.float32).astype(o_ref.dtype)


def build_pdo_kernel(weight, inv_transformation, tran_to_partial_coef, partial_dict):
    """Reproduces get_coef + the kernel construction of OpenConv2d.forward."""
    in_c, out_c, k1, k2 = weight.shape
    assert k1 == 3 and k2 == 3
    betas = weight.reshape(-1, 9) @ inv_transformation                 # (in*out, 9)
    partial = partial_dict.reshape(15, 25)                             # (15, 25)
    kernels = [(betas @ a) @ partial for a in tran_to_partial_coef]    # 8 x (in*out, 25)
    kernel = jnp.stack(kernels, axis=1)                                # (in*out, 8, 25)
    kernel = kernel.reshape(in_c, out_c * P_NUM, 5, 5)
    kernel_oihw = jnp.transpose(kernel, (1, 0, 2, 3))                  # (out*8, in, 5, 5)
    return kernel_oihw


def _choose_tile_m(m_ext, halo, cin, kp, cfp, n_batch):
    """Largest lane-dense TM keeping per-step VMEM well under the v7x cap."""
    budget = 24 * 1024 * 1024           # conservative vs v7x's 64 MiB physical VMEM
    tm = min(2048, _round_up(m_ext, 128))

    def footprint(t):
        win = _round_up(t + halo, 128)
        # 2x-buffered x block + im2col scratch + 2x out block + 2x weight block
        return 4 * (2 * cin * win + kp * t + 2 * cfp * t + 2 * cfp * kp)

    while tm > 128 and footprint(tm) > budget:
        tm -= 128
    # v7x has 2 TensorCores: guarantee >= 2 parallel grid steps when possible.
    if n_batch * _cdiv(m_ext, tm) < 2 and m_ext > 128:
        tm = _round_up(_cdiv(m_ext, 2), 128)
    return tm, footprint(tm)


def pdo_econv_forward(x_nchw, weight, inv_transformation, tran_to_partial_coef,
                      partial_dict, padding, stride=1):
    in_c, out_c, _, _ = weight.shape
    assert stride == 1, "only stride=1 implemented"  # TODO(synk): general stride/dilation/groups
    # TODO(synk): the module passes self.bias (a bool) to F.conv2d, which is not a
    # valid bias tensor in PyTorch; no bias is applied here.

    n, cin, h, w = x_nchw.shape
    assert cin == in_c
    cf = out_c * P_NUM

    kernel_oihw = build_pdo_kernel(weight, inv_transformation,
                                   tran_to_partial_coef, partial_dict)

    hp, wp = h + 2 * padding, w + 2 * padding
    ho, wo = hp - (KH - 1), wp - (KW - 1)

    k = KH * KW * cin
    kp = _round_up(k, 8)                 # sublane granule only (pad lives in VMEM)
    cfp = _round_up(cf, 8)

    # Outputs are computed at "extended" flat positions m = y*Wp + x for the
    # full padded width Wp; columns x >= Wo wrap into the next row and are
    # discarded afterwards.  This turns every tap into a contiguous slice of
    # the flattened padded input, enabling in-kernel im2col from ~1x traffic.
    m_ext = ho * wp
    halo = (KH - 1) * wp + (KW - 1)

    tm, fp_bytes = _choose_tile_m(m_ext, halo, cin, kp, cfp, n)
    t_tiles = _cdiv(m_ext, tm)
    win = _round_up(tm + halo, 128)
    lf = (t_tiles - 1) * tm + win        # >= hp*wp + 4 always

    compute_dtype = jnp.float32

    # ---- wrapper glue (pad + window gather, ~1x activation bytes) ------------
    xp = jnp.pad(x_nchw, ((0, 0), (0, 0), (padding, padding), (padding, padding)))
    xflat = xp.reshape(n, cin, hp * wp).astype(compute_dtype)
    xflat = jnp.pad(xflat, ((0, 0), (0, 0), (0, lf - hp * wp)))
    # Overlap between adjacent windows is only `halo` elements (tiny vs TM).
    xwin = jnp.stack([xflat[:, :, t * tm:t * tm + win] for t in range(t_tiles)],
                     axis=1)                                   # (N, T, Cin, WIN)

    # (Cf, Cin, 5, 5) -> (Cf, KH, KW, Cin) -> (Cf, K): K ordered (ky, kx, c),
    # matching the in-kernel tap loop.
    w2d = jnp.transpose(kernel_oihw, (0, 2, 3, 1)).reshape(cf, k)
    w2d = jnp.pad(w2d, ((0, cfp - cf), (0, kp - k))).astype(compute_dtype)

    kern = functools.partial(_pdo_fused_kernel, cin=cin, wp=wp, tm=tm)

    flops = 2 * n * m_ext * k * cf
    bytes_accessed = xwin.size * 4 + w2d.size * 4 + n * cfp * t_tiles * tm * 4

    out_cm = pl.pallas_call(
        kern,
        out_shape=jax.ShapeDtypeStruct((n, cfp, t_tiles * tm), x_nchw.dtype),
        grid=(n, t_tiles),
        in_specs=[
            pl.BlockSpec((1, 1, cin, win), lambda b, t: (b, t, 0, 0)),
            pl.BlockSpec((cfp, kp), lambda b, t: (0, 0)),
        ],
        out_specs=pl.BlockSpec((1, cfp, tm), lambda b, t: (b, 0, t)),
        scratch_shapes=[pltpu.VMEM((kp, tm), compute_dtype)],
        compiler_params=pltpu.CompilerParams(
            dimension_semantics=("parallel", "parallel"),
            vmem_limit_bytes=min(48 * 1024 * 1024,
                                 max(4 * fp_bytes, 32 * 1024 * 1024))),
        cost_estimate=pl.CostEstimate(flops=flops, transcendentals=0,
                                      bytes_accessed=bytes_accessed),
    )(xwin, w2d)

    # Drop channel padding and wrap-around columns; view as (N, out, P, Ho, Wo).
    out = out_cm[:, :cf, :m_ext].reshape(n, cf, ho, wp)[..., :wo]
    out = out.reshape(n, out_c, P_NUM, ho, wo)
    return out, kernel_oihw


if __name__ == "__main__":
    key = jax.random.PRNGKey(0)
    k_w, k_inv, k_tran, k_part, k_x = jax.random.split(key, 5)

    in_channels, out_channels, padding = 4, 4, 2

    # Deterministic weight init mimicking kaiming_uniform_(a=sqrt(5)) on the
    # module's (in, out, 3, 3) weight (torch fan_in = out_channels * 9).
    fan_in = out_channels * 9
    bound = math.sqrt(6.0 / ((1.0 + 5.0) * fan_in))
    weight = jax.random.uniform(k_w, (in_channels, out_channels, 3, 3),
                                jnp.float32, minval=-bound, maxval=bound)

    # TODO(synk): INV_TRANSFORMATION, TRAN_TO_PARTIAL_COEF and PARTIAL_DICT are
    # module-level constants defined outside the given source; deterministic
    # synthetic stand-ins with the correct shapes are used here.
    inv_transformation = 0.1 * jax.random.normal(k_inv, (9, 9), jnp.float32)
    tran_to_partial_coef = [
        0.1 * jax.random.normal(jax.random.fold_in(k_tran, i), (9, 15), jnp.float32)
        for i in range(P_NUM)
    ]
    partial_dict = 0.1 * jax.random.normal(k_part, (15, 5, 5), jnp.float32)

    x = jax.random.normal(k_x, (2, in_channels, 16, 16), jnp.float32)

    fwd = jax.jit(pdo_econv_forward, static_argnames=("padding", "stride"))
    out, kernel_oihw = fwd(x, weight, inv_transformation, tran_to_partial_coef,
                           partial_dict, padding=padding)
    out = jax.block_until_ready(out)
    assert out.shape == (2, out_channels, P_NUM, 16, 16), out.shape

    # Reference: exact f32 conv with the same generated 5x5 PDO filter bank
    # (module semantics).  Tolerance absorbs MXU f32-matmul rounding.
    ref = jax.lax.conv_general_dilated(
        x, kernel_oihw, window_strides=(1, 1),
        padding=((padding, padding), (padding, padding)),
        dimension_numbers=("NCHW", "OIHW", "NCHW"),
        precision=jax.lax.Precision.HIGHEST)
    ho, wo = ref.shape[-2], ref.shape[-1]
    ref = ref.reshape(x.shape[0], out_channels, P_NUM, ho, wo)
    np.testing.assert_allclose(np.asarray(out), np.asarray(ref),
                               rtol=2e-2, atol=2e-2)

    print("KERNEL_OK")
</pallas_src>

<mosaic_0001>
module attributes {stable_mosaic.version = 11 : i64} {
  func.func @_pdo_fused_kernel(%arg0: i32, %arg1: i32, %arg2: memref<1x1x4x512xf32, #tpu.memory_space<vmem>>, %arg3: memref<32x104xf32, #tpu.memory_space<vmem>>, %arg4: memref<1x32x384xf32, #tpu.memory_space<vmem>>, %arg5: memref<104x384xf32, #tpu.memory_space<vmem>>) attributes {dimension_semantics = [#tpu.dimension_semantics<parallel>, #tpu.dimension_semantics<parallel>], iteration_bounds = array<i64: 2, 1>, scalar_prefetch = 0 : i64, scratch_operands = 1 : i64, tpu.core_type = #tpu.core_type<tc>, window_params = [{transform_indices = @transform_0, window_bounds = array<i64: 1, 1, 4, 512>}, {pipeline_mode = #tpu.pipeline_mode<synchronous>, transform_indices = @transform_1, window_bounds = array<i64: 32, 104>}, {transform_indices = @transform_2, window_bounds = array<i64: 1, 32, 384>}]} {
    %cst = arith.constant 0.000000e+00 : f32
    %0 = vector.broadcast %cst : f32 to vector<104x384xf32>
    %c0 = arith.constant 0 : index
    %c0_0 = arith.constant 0 : index
    %1 = vector.load %arg5[%c0, %c0_0] : memref<104x384xf32, #tpu.memory_space<vmem>>, vector<104x384xf32>
    tpu.vector_store %arg5[%c0, %c0_0], %0 {strides = array<i32>} : memref<104x384xf32, #tpu.memory_space<vmem>>, vector<104x384xf32>,
    %c0_1 = arith.constant 0 : index
    %c0_2 = arith.constant 0 : index
    %c0_3 = arith.constant 0 : index
    %c0_4 = arith.constant 0 : index
    %2 = vector.load %arg2[%c0_1, %c0_2, %c0_3, %c0_4] : memref<1x1x4x512xf32, #tpu.memory_space<vmem>>, vector<1x1x4x384xf32>
    %3 = vector.shape_cast %2 : vector<1x1x4x384xf32> to vector<4x384xf32>
    %c0_5 = arith.constant 0 : index
    %c0_6 = arith.constant 0 : index
    %4 = vector.load %arg5[%c0_5, %c0_6] : memref<104x384xf32, #tpu.memory_space<vmem>>, vector<4x384xf32>
    tpu.vector_store %arg5[%c0_5, %c0_6], %3 {strides = array<i32>} : memref<104x384xf32, #tpu.memory_space<vmem>>, vector<4x384xf32>,
    %c0_7 = arith.constant 0 : index
    %c0_8 = arith.constant 0 : index
    %c0_9 = arith.constant 0 : index
    %c1 = arith.constant 1 : index
    %5 = vector.load %arg2[%c0_7, %c0_8, %c0_9, %c1] : memref<1x1x4x512xf32, #tpu.memory_space<vmem>>, vector<1x1x4x384xf32>
    %6 = vector.shape_cast %5 : vector<1x1x4x384xf32> to vector<4x384xf32>
    %c4 = arith.constant 4 : index
    %c0_10 = arith.constant 0 : index
    %7 = vector.load %arg5[%c4, %c0_10] : memref<104x384xf32, #tpu.memory_space<vmem>>, vector<4x384xf32>
    tpu.vector_store %arg5[%c4, %c0_10], %6 {strides = array<i32>} : memref<104x384xf32, #tpu.memory_space<vmem>>, vector<4x384xf32>,
    %c0_11 = arith.constant 0 : index
    %c0_12 = arith.constant 0 : index
    %c0_13 = arith.constant 0 : index
    %c2 = arith.constant 2 : index
    %8 = vector.load %arg2[%c0_11, %c0_12, %c0_13, %c2] : memref<1x1x4x512xf32, #tpu.memory_space<vmem>>, vector<1x1x4x384xf32>
    %9 = vector.shape_cast %8 : vector<1x1x4x384xf32> to vector<4x384xf32>
    %c8 = arith.constant 8 : index
    %c0_14 = arith.constant 0 : index
    %10 = vector.load %arg5[%c8, %c0_14] : memref<104x384xf32, #tpu.memory_space<vmem>>, vector<4x384xf32>
    tpu.vector_store %arg5[%c8, %c0_14], %9 {strides = array<i32>} : memref<104x384xf32, #tpu.memory_space<vmem>>, vector<4x384xf32>,
    %c0_15 = arith.constant 0 : index
    %c0_16 = arith.constant 0 : index
    %c0_17 = arith.constant 0 : index
    %c3 = arith.constant 3 : index
    %11 = vector.load %arg2[%c0_15, %c0_16, %c0_17, %c3] : memref<1x1x4x512xf32, #tpu.memory_space<vmem>>, vector<1x1x4x384xf32>
    %12 = vector.shape_cast %11 : vector<1x1x4x384xf32> to vector<4x384xf32>
    %c12 = arith.constant 12 : index
    %c0_18 = arith.constant 0 : index
    %13 = vector.load %arg5[%c12, %c0_18] : memref<104x384xf32, #tpu.memory_space<vmem>>, vector<4x384xf32>
    tpu.vector_store %arg5[%c12, %c0_18], %12 {strides = array<i32>} : memref<104x384xf32, #tpu.memory_space<vmem>>, vector<4x384xf32>,
    %c0_19 = arith.constant 0 : index
    %c0_20 = arith.constant 0 : index
    %c0_21 = arith.constant 0 : index
    %c4_22 = arith.constant 4 : index
    %14 = vector.load %arg2[%c0_19, %c0_20, %c0_21, %c4_22] : memref<1x1x4x512xf32, #tpu.memory_space<vmem>>, vector<1x1x4x384xf32>
    %15 = vector.shape_cast %14 : vector<1x1x4x384xf32> to vector<4x384xf32>
    %c16 = arith.constant 16 : index
    %c0_23 = arith.constant 0 : index
    %16 = vector.load %arg5[%c16, %c0_23] : memref<104x384xf32, #tpu.memory_space<vmem>>, vector<4x384xf32>
    tpu.vector_store %arg5[%c16, %c0_23], %15 {strides = array<i32>} : memref<104x384xf32, #tpu.memory_space<vmem>>, vector<4x384xf32>,
    %c0_24 = arith.constant 0 : index
    %c0_25 = arith.constant 0 : index
    %c0_26 = arith.constant 0 : index
    %c20 = arith.constant 20 : index
    %17 = vector.load %arg2[%c0_24, %c0_25, %c0_26, %c20] : memref<1x1x4x512xf32, #tpu.memory_space<vmem>>, vector<1x1x4x384xf32>
    %18 = vector.shape_cast %17 : vector<1x1x4x384xf32> to vector<4x384xf32>
    %c20_27 = arith.constant 20 : index
    %c0_28 = arith.constant 0 : index
    %19 = vector.load %arg5[%c20_27, %c0_28] : memref<104x384xf32, #tpu.memory_space<vmem>>, vector<4x384xf32>
    tpu.vector_store %arg5[%c20_27, %c0_28], %18 {strides = array<i32>} : memref<104x384xf32, #tpu.memory_space<vmem>>, vector<4x384xf32>,
    %c0_29 = arith.constant 0 : index
    %c0_30 = arith.constant 0 : index
    %c0_31 = arith.constant 0 : index
    %c21 = arith.constant 21 : index
    %20 = vector.load %arg2[%c0_29, %c0_30, %c0_31, %c21] : memref<1x1x4x512xf32, #tpu.memory_space<vmem>>, vector<1x1x4x384xf32>
    %21 = vector.shape_cast %20 : vector<1x1x4x384xf32> to vector<4x384xf32>
    %c24 = arith.constant 24 : index
    %c0_32 = arith.constant 0 : index
    %22 = vector.load %arg5[%c24, %c0_32] : memref<104x384xf32, #tpu.memory_space<vmem>>, vector<4x384xf32>
    tpu.vector_store %arg5[%c24, %c0_32], %21 {strides = array<i32>} : memref<104x384xf32, #tpu.memory_space<vmem>>, vector<4x384xf32>,
    %c0_33 = arith.constant 0 : index
    %c0_34 = arith.constant 0 : index
    %c0_35 = arith.constant 0 : index
    %c22 = arith.constant 22 : index
    %23 = vector.load %arg2[%c0_33, %c0_34, %c0_35, %c22] : memref<1x1x4x512xf32, #tpu.memory_space<vmem>>, vector<1x1x4x384xf32>
    %24 = vector.shape_cast %23 : vector<1x1x4x384xf32> to vector<4x384xf32>
    %c28 = arith.constant 28 : index
    %c0_36 = arith.constant 0 : index
    %25 = vector.load %arg5[%c28, %c0_36] : memref<104x384xf32, #tpu.memory_space<vmem>>, vector<4x384xf32>
    tpu.vector_store %arg5[%c28, %c0_36], %24 {strides = array<i32>} : memref<104x384xf32, #tpu.memory_space<vmem>>, vector<4x384xf32>,
    %c0_37 = arith.constant 0 : index
    %c0_38 = arith.constant 0 : index
    %c0_39 = arith.constant 0 : index
    %c23 = arith.constant 23 : index
    %26 = vector.load %arg2[%c0_37, %c0_38, %c0_39, %c23] : memref<1x1x4x512xf32, #tpu.memory_space<vmem>>, vector<1x1x4x384xf32>
    %27 = vector.shape_cast %26 : vector<1x1x4x384xf32> to vector<4x384xf32>
    %c32 = arith.constant 32 : index
    %c0_40 = arith.constant 0 : index
    %28 = vector.load %arg5[%c32, %c0_40] : memref<104x384xf32, #tpu.memory_space<vmem>>, vector<4x384xf32>
    tpu.vector_store %arg5[%c32, %c0_40], %27 {strides = array<i32>} : memref<104x384xf32, #tpu.memory_space<vmem>>, vector<4x384xf32>,
    %c0_41 = arith.constant 0 : index
    %c0_42 = arith.constant 0 : index
    %c0_43 = arith.constant 0 : index
    %c24_44 = arith.constant 24 : index
    %29 = vector.load %arg2[%c0_41, %c0_42, %c0_43, %c24_44] : memref<1x1x4x512xf32, #tpu.memory_space<vmem>>, vector<1x1x4x384xf32>
    %30 = vector.shape_cast %29 : vector<1x1x4x384xf32> to vector<4x384xf32>
    %c36 = arith.constant 36 : index
    %c0_45 = arith.constant 0 : index
    %31 = vector.load %arg5[%c36, %c0_45] : memref<104x384xf32, #tpu.memory_space<vmem>>, vector<4x384xf32>
    tpu.vector_store %arg5[%c36, %c0_45], %30 {strides = array<i32>} : memref<104x384xf32, #tpu.memory_space<vmem>>, vector<4x384xf32>,
    %c0_46 = arith.constant 0 : index
    %c0_47 = arith.constant 0 : index
    %c0_48 = arith.constant 0 : index
    %c40 = arith.constant 40 : index
    %32 = vector.load %arg2[%c0_46, %c0_47, %c0_48, %c40] : memref<1x1x4x512xf32, #tpu.memory_space<vmem>>, vector<1x1x4x384xf32>
    %33 = vector.shape_cast %32 : vector<1x1x4x384xf32> to vector<4x384xf32>
    %c40_49 = arith.constant 40 : index
    %c0_50 = arith.constant 0 : index
    %34 = vector.load %arg5[%c40_49, %c0_50] : memref<104x384xf32, #tpu.memory_space<vmem>>, vector<4x384xf32>
    tpu.vector_store %arg5[%c40_49, %c0_50], %33 {strides = array<i32>} : memref<104x384xf32, #tpu.memory_space<vmem>>, vector<4x384xf32>,
    %c0_51 = arith.constant 0 : index
    %c0_52 = arith.constant 0 : index
    %c0_53 = arith.constant 0 : index
    %c41 = arith.constant 41 : index
    %35 = vector.load %arg2[%c0_51, %c0_52, %c0_53, %c41] : memref<1x1x4x512xf32, #tpu.memory_space<vmem>>, vector<1x1x4x384xf32>
    %36 = vector.shape_cast %35 : vector<1x1x4x384xf32> to vector<4x384xf32>
    %c44 = arith.constant 44 : index
    %c0_54 = arith.constant 0 : index
    %37 = vector.load %arg5[%c44, %c0_54] : memref<104x384xf32, #tpu.memory_space<vmem>>, vector<4x384xf32>
    tpu.vector_store %arg5[%c44, %c0_54], %36 {strides = array<i32>} : memref<104x384xf32, #tpu.memory_space<vmem>>, vector<4x384xf32>,
    %c0_55 = arith.constant 0 : index
    %c0_56 = arith.constant 0 : index
    %c0_57 = arith.constant 0 : index
    %c42 = arith.constant 42 : index
    %38 = vector.load %arg2[%c0_55, %c0_56, %c0_57, %c42] : memref<1x1x4x512xf32, #tpu.memory_space<vmem>>, vector<1x1x4x384xf32>
    %39 = vector.shape_cast %38 : vector<1x1x4x384xf32> to vector<4x384xf32>
    %c48 = arith.constant 48 : index
    %c0_58 = arith.constant 0 : index
    %40 = vector.load %arg5[%c48, %c0_58] : memref<104x384xf32, #tpu.memory_space<vmem>>, vector<4x384xf32>
    tpu.vector_store %arg5[%c48, %c0_58], %39 {strides = array<i32>} : memref<104x384xf32, #tpu.memory_space<vmem>>, vector<4x384xf32>,
    %c0_59 = arith.constant 0 : index
    %c0_60 = arith.constant 0 : index
    %c0_61 = arith.constant 0 : index
    %c43 = arith.constant 43 : index
    %41 = vector.load %arg2[%c0_59, %c0_60, %c0_61, %c43] : memref<1x1x4x512xf32, #tpu.memory_space<vmem>>, vector<1x1x4x384xf32>
    %42 = vector.shape_cast %41 : vector<1x1x4x384xf32> to vector<4x384xf32>
    %c52 = arith.constant 52 : index
    %c0_62 = arith.constant 0 : index
    %43 = vector.load %arg5[%c52, %c0_62] : memref<104x384xf32, #tpu.memory_space<vmem>>, vector<4x384xf32>
    tpu.vector_store %arg5[%c52, %c0_62], %42 {strides = array<i32>} : memref<104x384xf32, #tpu.memory_space<vmem>>, vector<4x384xf32>,
    %c0_63 = arith.constant 0 : index
    %c0_64 = arith.constant 0 : index
    %c0_65 = arith.constant 0 : index
    %c44_66 = arith.constant 44 : index
    %44 = vector.load %arg2[%c0_63, %c0_64, %c0_65, %c44_66] : memref<1x1x4x512xf32, #tpu.memory_space<vmem>>, vector<1x1x4x384xf32>
    %45 = vector.shape_cast %44 : vector<1x1x4x384xf32> to vector<4x384xf32>
    %c56 = arith.constant 56 : index
    %c0_67 = arith.constant 0 : index
    %46 = vector.load %arg5[%c56, %c0_67] : memref<104x384xf32, #tpu.memory_space<vmem>>, vector<4x384xf32>
    tpu.vector_store %arg5[%c56, %c0_67], %45 {strides = array<i32>} : memref<104x384xf32, #tpu.memory_space<vmem>>, vector<4x384xf32>,
    %c0_68 = arith.constant 0 : index
    %c0_69 = arith.constant 0 : index
    %c0_70 = arith.constant 0 : index
    %c60 = arith.constant 60 : index
    %47 = vector.load %arg2[%c0_68, %c0_69, %c0_70, %c60] : memref<1x1x4x512xf32, #tpu.memory_space<vmem>>, vector<1x1x4x384xf32>
    %48 = vector.shape_cast %47 : vector<1x1x4x384xf32> to vector<4x384xf32>
    %c60_71 = arith.constant 60 : index
    %c0_72 = arith.constant 0 : index
    %49 = vector.load %arg5[%c60_71, %c0_72] : memref<104x384xf32, #tpu.memory_space<vmem>>, vector<4x384xf32>
    tpu.vector_store %arg5[%c60_71, %c0_72], %48 {strides = array<i32>} : memref<104x384xf32, #tpu.memory_space<vmem>>, vector<4x384xf32>,
    %c0_73 = arith.constant 0 : index
    %c0_74 = arith.constant 0 : index
    %c0_75 = arith.constant 0 : index
    %c61 = arith.constant 61 : index
    %50 = vector.load %arg2[%c0_73, %c0_74, %c0_75, %c61] : memref<1x1x4x512xf32, #tpu.memory_space<vmem>>, vector<1x1x4x384xf32>
    %51 = vector.shape_cast %50 : vector<1x1x4x384xf32> to vector<4x384xf32>
    %c64 = arith.constant 64 : index
    %c0_76 = arith.constant 0 : index
    %52 = vector.load %arg5[%c64, %c0_76] : memref<104x384xf32, #tpu.memory_space<vmem>>, vector<4x384xf32>
    tpu.vector_store %arg5[%c64, %c0_76], %51 {strides = array<i32>} : memref<104x384xf32, #tpu.memory_space<vmem>>, vector<4x384xf32>,
    %c0_77 = arith.constant 0 : index
    %c0_78 = arith.constant 0 : index
    %c0_79 = arith.constant 0 : index
    %c62 = arith.constant 62 : index
    %53 = vector.load %arg2[%c0_77, %c0_78, %c0_79, %c62] : memref<1x1x4x512xf32, #tpu.memory_space<vmem>>, vector<1x1x4x384xf32>
    %54 = vector.shape_cast %53 : vector<1x1x4x384xf32> to vector<4x384xf32>
    %c68 = arith.constant 68 : index
    %c0_80 = arith.constant 0 : index
    %55 = vector.load %arg5[%c68, %c0_80] : memref<104x384xf32, #tpu.memory_space<vmem>>, vector<4x384xf32>
    tpu.vector_store %arg5[%c68, %c0_80], %54 {strides = array<i32>} : memref<104x384xf32, #tpu.memory_space<vmem>>, vector<4x384xf32>,
    %c0_81 = arith.constant 0 : index
    %c0_82 = arith.constant 0 : index
    %c0_83 = arith.constant 0 : index
    %c63 = arith.constant 63 : index
    %56 = vector.load %arg2[%c0_81, %c0_82, %c0_83, %c63] : memref<1x1x4x512xf32, #tpu.memory_space<vmem>>, vector<1x1x4x384xf32>
    %57 = vector.shape_cast %56 : vector<1x1x4x384xf32> to vector<4x384xf32>
    %c72 = arith.constant 72 : index
    %c0_84 = arith.constant 0 : index
    %58 = vector.load %arg5[%c72, %c0_84] : memref<104x384xf32, #tpu.memory_space<vmem>>, vector<4x384xf32>
    tpu.vector_store %arg5[%c72, %c0_84], %57 {strides = array<i32>} : memref<104x384xf32, #tpu.memory_space<vmem>>, vector<4x384xf32>,
    %c0_85 = arith.constant 0 : index
    %c0_86 = arith.constant 0 : index
    %c0_87 = arith.constant 0 : index
    %c64_88 = arith.constant 64 : index
    %59 = vector.load %arg2[%c0_85, %c0_86, %c0_87, %c64_88] : memref<1x1x4x512xf32, #tpu.memory_space<vmem>>, vector<1x1x4x384xf32>
    %60 = vector.shape_cast %59 : vector<1x1x4x384xf32> to vector<4x384xf32>
    %c76 = arith.constant 76 : index
    %c0_89 = arith.constant 0 : index
    %61 = vector.load %arg5[%c76, %c0_89] : memref<104x384xf32, #tpu.memory_space<vmem>>, vector<4x384xf32>
    tpu.vector_store %arg5[%c76, %c0_89], %60 {strides = array<i32>} : memref<104x384xf32, #tpu.memory_space<vmem>>, vector<4x384xf32>,
    %c0_90 = arith.constant 0 : index
    %c0_91 = arith.constant 0 : index
    %c0_92 = arith.constant 0 : index
    %c80 = arith.constant 80 : index
    %62 = vector.load %arg2[%c0_90, %c0_91, %c0_92, %c80] : memref<1x1x4x512xf32, #tpu.memory_space<vmem>>, vector<1x1x4x384xf32>
    %63 = vector.shape_cast %62 : vector<1x1x4x384xf32> to vector<4x384xf32>
    %c80_93 = arith.constant 80 : index
    %c0_94 = arith.constant 0 : index
    %64 = vector.load %arg5[%c80_93, %c0_94] : memref<104x384xf32, #tpu.memory_space<vmem>>, vector<4x384xf32>
    tpu.vector_store %arg5[%c80_93, %c0_94], %63 {strides = array<i32>} : memref<104x384xf32, #tpu.memory_space<vmem>>, vector<4x384xf32>,
    %c0_95 = arith.constant 0 : index
    %c0_96 = arith.constant 0 : index
    %c0_97 = arith.constant 0 : index
    %c81 = arith.constant 81 : index
    %65 = vector.load %arg2[%c0_95, %c0_96, %c0_97, %c81] : memref<1x1x4x512xf32, #tpu.memory_space<vmem>>, vector<1x1x4x384xf32>
    %66 = vector.shape_cast %65 : vector<1x1x4x384xf32> to vector<4x384xf32>
    %c84 = arith.constant 84 : index
    %c0_98 = arith.constant 0 : index
    %67 = vector.load %arg5[%c84, %c0_98] : memref<104x384xf32, #tpu.memory_space<vmem>>, vector<4x384xf32>
    tpu.vector_store %arg5[%c84, %c0_98], %66 {strides = array<i32>} : memref<104x384xf32, #tpu.memory_space<vmem>>, vector<4x384xf32>,
    %c0_99 = arith.constant 0 : index
    %c0_100 = arith.constant 0 : index
    %c0_101 = arith.constant 0 : index
    %c82 = arith.constant 82 : index
    %68 = vector.load %arg2[%c0_99, %c0_100, %c0_101, %c82] : memref<1x1x4x512xf32, #tpu.memory_space<vmem>>, vector<1x1x4x384xf32>
    %69 = vector.shape_cast %68 : vector<1x1x4x384xf32> to vector<4x384xf32>
    %c88 = arith.constant 88 : index
    %c0_102 = arith.constant 0 : index
    %70 = vector.load %arg5[%c88, %c0_102] : memref<104x384xf32, #tpu.memory_space<vmem>>, vector<4x384xf32>
    tpu.vector_store %arg5[%c88, %c0_102], %69 {strides = array<i32>} : memref<104x384xf32, #tpu.memory_space<vmem>>, vector<4x384xf32>,
    %c0_103 = arith.constant 0 : index
    %c0_104 = arith.constant 0 : index
    %c0_105 = arith.constant 0 : index
    %c83 = arith.constant 83 : index
    %71 = vector.load %arg2[%c0_103, %c0_104, %c0_105, %c83] : memref<1x1x4x512xf32, #tpu.memory_space<vmem>>, vector<1x1x4x384xf32>
    %72 = vector.shape_cast %71 : vector<1x1x4x384xf32> to vector<4x384xf32>
    %c92 = arith.constant 92 : index
    %c0_106 = arith.constant 0 : index
    %73 = vector.load %arg5[%c92, %c0_106] : memref<104x384xf32, #tpu.memory_space<vmem>>, vector<4x384xf32>
    tpu.vector_store %arg5[%c92, %c0_106], %72 {strides = array<i32>} : memref<104x384xf32, #tpu.memory_space<vmem>>, vector<4x384xf32>,
    %c0_107 = arith.constant 0 : index
    %c0_108 = arith.constant 0 : index
    %c0_109 = arith.constant 0 : index
    %c84_110 = arith.constant 84 : index
    %74 = vector.load %arg2[%c0_107, %c0_108, %c0_109, %c84_110] : memref<1x1x4x512xf32, #tpu.memory_space<vmem>>, vector<1x1x4x384xf32>
    %75 = vector.shape_cast %74 : vector<1x1x4x384xf32> to vector<4x384xf32>
    %c96 = arith.constant 96 : index
    %c0_111 = arith.constant 0 : index
    %76 = vector.load %arg5[%c96, %c0_111] : memref<104x384xf32, #tpu.memory_space<vmem>>, vector<4x384xf32>
    tpu.vector_store %arg5[%c96, %c0_111], %75 {strides = array<i32>} : memref<104x384xf32, #tpu.memory_space<vmem>>, vector<4x384xf32>,
    %c0_112 = arith.constant 0 : index
    %c0_113 = arith.constant 0 : index
    %77 = vector.load %arg3[%c0_112, %c0_113] : memref<32x104xf32, #tpu.memory_space<vmem>>, vector<32x104xf32>
    %c0_114 = arith.constant 0 : index
    %c0_115 = arith.constant 0 : index
    %78 = vector.load %arg5[%c0_114, %c0_115] : memref<104x384xf32, #tpu.memory_space<vmem>>, vector<104x384xf32>
    %cst_116 = arith.constant dense<0.000000e+00> : vector<32x384xf32>
    %79 = tpu.matmul %77, %78, %cst_116 {dimension_numbers = #tpu.dot_dimension_numbers<[1], [0], [0], [1], [0, 0, 1, 1], [], []>} : vector<32x104xf32>, vector<104x384xf32>, vector<32x384xf32> -> vector<32x384xf32>
    %c0_117 = arith.constant 0 : index
    %c0_118 = arith.constant 0 : index
    %c0_119 = arith.constant 0 : index
    %80 = vector.load %arg4[%c0_117, %c0_118, %c0_119] : memref<1x32x384xf32, #tpu.memory_space<vmem>>, vector<1x32x384xf32>
    %81 = vector.shape_cast %80 : vector<1x32x384xf32> to vector<32x384xf32>
    %82 = vector.shape_cast %79 : vector<32x384xf32> to vector<1x32x384xf32>
    tpu.vector_store %arg4[%c0_117, %c0_118, %c0_119], %82 {strides = array<i32>} : memref<1x32x384xf32, #tpu.memory_space<vmem>>, vector<1x32x384xf32>,
    return
  }
  func.func @transform_0(%arg0: i32, %arg1: i32) -> (i32, i32, i32, i32) {
    %c0_i32 = arith.constant 0 : i32
    %c0_i32_0 = arith.constant 0 : i32
    %c0_i32_1 = arith.constant 0 : i32
    return %arg0, %arg1, %c0_i32, %c0_i32_0 : i32, i32, i32, i32
  }
  func.func @transform_1(%arg0: i32, %arg1: i32) -> (i32, i32) {
    %c0_i32 = arith.constant 0 : i32
    %c0_i32_0 = arith.constant 0 : i32
    %c0_i32_1 = arith.constant 0 : i32
    return %c0_i32, %c0_i32_0 : i32, i32
  }
  func.func @transform_2(%arg0: i32, %arg1: i32) -> (i32, i32, i32) {
    %c0_i32 = arith.constant 0 : i32
    %c0_i32_0 = arith.constant 0 : i32
    return %arg0, %c0_i32, %arg1 : i32, i32, i32
  }
}

</mosaic_0001>

<bundles_post_ra>
// kernel: pdo_econv_forward.1
= control target key start
LH: loop header
LB: loop body
LE: loop exit
PB: predicated region body
PF: predicated region fallthrough
CT: control target
= control target key end

     0   :  { %s1369_s9 = smov 0   ;;  %s1371_s10 = smov 0   ;;  %s1845_s0 = inlined_call_operand.vmem [shape: f32[2,1,4,512], index: 0, kind: input, shape index: {}]   ;;  %s1846_s1 = inlined_call_operand.vmem [shape: f32[32,104], index: 1, kind: input, shape index: {}]   ;;  %s1847_s2 = inlined_call_operand.vmem [shape: f32[2,32,384], index: 2, kind: output, shape index: {}]  }
   0x1   :  { %s1373_s11 = smov 0  }
   0x2 LB: > { %s24_s12 = sadd.s32 1, %s1323_s10  ;;  %p1139_p0 = scmp.ge.s32.totalorder %s1327_s11, 1  ;;  %s1327_s11 = sphi %s1373_s11, %s12_s11   ;;  %s1323_s10 = sphi %s1371_s10, %s1849_s10   ;;  %s1319_s9 = sphi %s1369_s9, %s1848_s9  }
   0x3   : > { %p26_p1 = scmp.ge.s32.totalorder %s24_s12, 2  ;;  %p132_p2 = scmp.lt.s32.totalorder %s1327_s11, 3 }
   0x5   : > { %s1851_s12 = smov (%p26_p1, %s24_s12), 0  ;;  %p133_p3 = pnand %p1139_p0, %p132_p2 }
   0x6   : > { %p162_p4 = scmp.lt.s32.totalorder (!%p133_p3), %s1319_s9, 1  ;;  %v1329_v0 = vmov (!%p133_p3), 0.0   ;;  %s1330_s17 = smov (!%p133_p3), 126   ;;  %vm266_vm0 = vcmask (!%p133_p3), 1031168   ;;  %vm290_vm1 = vcmask (!%p133_p3), 1022976   ;;  %vm242_vm2 = vcmask (!%p133_p3), 1039360  }
   0x7   : > { %136 = sbr.rel (%p133_p3) target bundleno = 556 (0x22c), region = 28  ;;  %185 = vst [vmem:[#allocation2 + $0x20] sm:$0xff] (!%p133_p3), %v1329_v0  ;;  %181 = vst [vmem:[#allocation2] sm:$0xff] (!%p133_p3), %v1329_v0  ;;  %923 = vmatprep.mubr.f32.mxu0 (!%p133_p3), %v1329_v0  ;;  %s1331_s18 = smov (!%p133_p3), 127   ;;  %vm314_vm3 = vcmask (!%p133_p3), 1014784   ;;  %vm338_vm4 = vcmask (!%p133_p3), 883712  }
   0x8   : > { %182 = vst [vmem:[#allocation2 + $0x8] sm:$0xff] (!%p133_p3), %v1329_v0  ;;  %183 = vst [vmem:[#allocation2 + $0x10] sm:$0xff] (!%p133_p3), %v1329_v0  ;;  %s1332_s19 = smov (!%p133_p3), 125   ;;  %s1333_s20 = smov (!%p133_p3), 124   ;;  %vm362_vm5 = vcmask (!%p133_p3), 875520   ;;  %vm386_vm6 = vcmask (!%p133_p3), 867328  }
   0x9   : > { %184 = vst [vmem:[#allocation2 + $0x18] sm:$0xff] (!%p133_p3), %v1329_v0  ;;  %186 = vst [vmem:[#allocation2 + $0x28] sm:$0xff] (!%p133_p3), %v1329_v0  ;;  %s1334_s21 = smov (!%p133_p3), 108   ;;  %s1335_s22 = smov (!%p133_p3), 107   ;;  %vm410_vm7 = vcmask (!%p133_p3), 859136   ;;  %vm434_vm8 = vcmask (!%p133_p3), 850944  }
   0xa   : > { %187 = vst [vmem:[#allocation2 + $0x30] sm:$0xff] (!%p133_p3), %v1329_v0  ;;  %188 = vst [vmem:[#allocation2 + $0x38] sm:$0xff] (!%p133_p3), %v1329_v0  ;;  %s1336_s23 = smov (!%p133_p3), 106   ;;  %s1337_s24 = smov (!%p133_p3), 105   ;;  %vm458_vm9 = vcmask (!%p133_p3), 719872   ;;  %vm482_vm10 = vcmask (!%p133_p3), 711680  }
   0xb   : > { %189 = vst [vmem:[#allocation2 + $0x40] sm:$0xff] (!%p133_p3), %v1329_v0  ;;  %190 = vst [vmem:[#allocation2 + $0x48] sm:$0xff] (!%p133_p3), %v1329_v0  ;;  %s1338_s25 = smov (!%p133_p3), 104   ;;  %s1339_s26 = smov (!%p133_p3), 88   ;;  %vm506_vm11 = vcmask (!%p133_p3), 703488   ;;  %vm530_vm12 = vcmask (!%p133_p3), 695296  }
   0xc   : > { %191 = vst [vmem:[#allocation2 + $0x50] sm:$0xff] (!%p133_p3), %v1329_v0  ;;  %192 = vst [vmem:[#allocation2 + $0x58] sm:$0xff] (!%p133_p3), %v1329_v0  ;;  %s1340_s27 = smov (!%p133_p3), 87   ;;  %s1341_s28 = smov (!%p133_p3), 86   ;;  %vm554_vm13 = vcmask (!%p133_p3), 687104   ;;  %vm578_vm14 = vcmask (!%p133_p3), 556032  }
   0xd   : > { %193 = vst [vmem:[#allocation2 + $0x60] sm:$0xff] (!%p133_p3), %v1329_v0  ;;  %194 = vst [vmem:[#allocation2 + $0x68] sm:$0xff] (!%p133_p3), %v1329_v0  ;;  %s1342_s29 = smov (!%p133_p3), 85   ;;  %s1343_s30 = smov (!%p133_p3), 84   ;;  %vm602_vm15 = vcmask (!%p133_p3), 547840  }
   0xe   : > { %195 = vst [vmem:[#allocation2 + $0x70] sm:$0xff] %v1329_v0  ;;  %196 = vst [vmem:[#allocation2 + $0x78] sm:$0xff] %v1329_v0  ;;  %s1853_s9 = smov (!%p162_p4, %s1319_s9), 1  ;;  %s1344_s3 = smov 68  }
   0xf   : > { %197 = vst [vmem:[#allocation2 + $0x80] sm:$0xff] %v1329_v0  ;;  %198 = vst [vmem:[#allocation2 + $0x88] sm:$0xff] %v1329_v0  ;;  %s1153_s13 = sshll.u32 %s1853_s9, 4  ;;  %s1345_s4 = smov 67  }
  0x10   : > { %199 = vst [vmem:[#allocation2 + $0x90] sm:$0xff] %v1329_v0  ;;  %200 = vst [vmem:[#allocation2 + $0x98] sm:$0xff] %v1329_v0  ;;  %s170_s16 = scalar_lea.vmem %s1845_s0, %s1153_s13  ;;  %s1346_s5 = smov 66  }
  0x11   : > { %201 = vst [vmem:[#allocation2 + $0xa0] sm:$0xff] %v1329_v0  ;;  %202 = vst [vmem:[#allocation2 + $0xa8] sm:$0xff] %v1329_v0  ;;  %v1439_v1 = vld [vmem:[%s170_s16 + $0x8] sm:$0xff]  ;;  %v1441_v2 = vld [vmem:[%s170_s16] sm:$0xff]  ;;  %s1347_s6 = smov 65   ;;  %s1348_s7 = smov 64  }
  0x12   : > { %203 = vst [vmem:[#allocation2 + $0xb0] sm:$0xff] %v1329_v0  ;;  %204 = vst [vmem:[#allocation2 + $0xb8] sm:$0xff] %v1329_v0  ;;  %262 = vrot.lane.b32.xlu1 %v1439_v1, %s1330_s17  ;;  %236 = vrot.lane.b32.xlu0 %v1441_v2, %s1331_s18  ;;  %v1449_v3 = vcombine.high %v1441_v2, %v1441_v2  ;;  %v1458_v4 = vcombine.low %v1439_v1, %v1439_v1  ;;  %v221_v6 = vld [vmem:[%s170_s16 + $0x8] sm:$0xf]  ;;  %s1349_s8 = smov 48   ;;  %s1350_s13 = smov 47  }
  0x13   : > { %205 = vst [vmem:[#allocation2 + $0xc0] sm:$0xff] %v1329_v0  ;;  %206 = vst [vmem:[#allocation2 + $0xc8] sm:$0xff] %v1329_v0  ;;  %v1462_v5 = vcombine.low %v1441_v2, %v1441_v2  ;;  %v1496_v7 = vcombine.high %v1439_v1, %v1439_v1  ;;  %s1351_s14 = smov 46   ;;  %s1352_s15 = smov 45  }
  0x14   : > { %207 = vst [vmem:[#allocation2 + $0xd0] sm:$0xff] %v1329_v0  ;;  %208 = vst [vmem:[#allocation2 + $0xd8] sm:$0xff] %v1329_v0  ;;  %s1353_s16 = smov 44  }
  0x15   : > { %209 = vst [vmem:[#allocation2 + $0xe0] sm:$0xff] %v1329_v0  ;;  %210 = vst [vmem:[#allocation2 + $0xe8] sm:$0xff] %v1329_v0 }
  0x16   : > { %211 = vst [vmem:[#allocation2 + $0xf0] sm:$0xff] %v1329_v0  ;;  %212 = vst [vmem:[#allocation2 + $0xf8] sm:$0xff] %v1329_v0  ;;  %260 = vrot.lane.b32.xlu1 %v1449_v3, %s1330_s17  ;;  %284 = vrot.lane.b32.xlu0 %v1441_v2, %s1332_s19 }
  0x17   : > { %213 = vst [vmem:[#allocation2 + $0x100] sm:$0xff] %v1329_v0  ;;  %214 = vst [vmem:[#allocation2 + $0x108] sm:$0xff] %v1329_v0 }
  0x18   : > { %215 = vst [vmem:[#allocation2 + $0x110] sm:$0xff] %v1329_v0  ;;  %216 = vst [vmem:[#allocation2 + $0x118] sm:$0xff] %v1329_v0 }
  0x19   : > { %217 = vst [vmem:[#allocation2 + $0x120] sm:$0xff] %v1329_v0  ;;  %218 = vst [vmem:[#allocation2 + $0x128] sm:$0xff] %v1329_v0 }
  0x1a   : > { %219 = vst [vmem:[#allocation2 + $0x130] sm:$0xff] %v1329_v0  ;;  %225 = vst [vmem:[#allocation2] sm:$0xf] %v1441_v2  ;;  %286 = vrot.lane.b32.xlu1 %v1458_v4, %s1332_s19  ;;  %238 = vrot.lane.b32.xlu0 %v1458_v4, %s1331_s18 }
  0x1b   : > { %226 = vst [vmem:[#allocation2 + $0x8] sm:$0xf] %v1449_v3  ;;  %227 = vst [vmem:[#allocation2 + $0x10] sm:$0xf] %v221_v6 }
  0x1e   : > { %258 = vrot.lane.b32.xlu1 %v1441_v2, %s1330_s17  ;;  %234 = vrot.lane.b32.xlu0 %v1462_v5, %s1331_s18 }
  0x22   : > { %308 = vrot.lane.b32.xlu1 %v1449_v3, %s1333_s20  ;;  %282 = vrot.lane.b32.xlu0 %v1462_v5, %s1332_s19 }
  0x26   : > { %332 = vrot.lane.b32.xlu1 %v1441_v2, %s1334_s21  ;;  %310 = vrot.lane.b32.xlu0 %v1439_v1, %s1333_s20 }
  0x2a   : > { %356 = vrot.lane.b32.xlu1 %v1449_v3, %s1335_s22  ;;  %334 = vrot.lane.b32.xlu0 %v1458_v4, %s1334_s21 }
  0x2e   : > { %380 = vrot.lane.b32.xlu1 %v1441_v2, %s1336_s23  ;;  %358 = vrot.lane.b32.xlu0 %v1439_v1, %s1335_s22 }
  0x32   : > { %306 = vrot.lane.b32.xlu1 %v1441_v2, %s1333_s20  ;;  %382 = vrot.lane.b32.xlu0 %v1458_v4, %s1336_s23 }
  0x36   : > { %354 = vrot.lane.b32.xlu1 %v1441_v2, %s1335_s22  ;;  %330 = vrot.lane.b32.xlu0 %v1462_v5, %s1334_s21 }
  0x3a   : > { %240 = vrot.lane.b32.xlu1 %v1439_v1, %s1331_s18  ;;  %378 = vrot.lane.b32.xlu0 %v1462_v5, %s1336_s23 }
  0x3e   : > { %288 = vrot.lane.b32.xlu1 %v1439_v1, %s1332_s19  ;;  %264 = vrot.lane.b32.xlu0 %v1496_v7, %s1330_s17 }
  0x42   : > { %406 = vrot.lane.b32.xlu1 %v1439_v1, %s1337_s24  ;;  %404 = vrot.lane.b32.xlu0 %v1449_v3, %s1337_s24 }
  0x46   : > { %430 = vrot.lane.b32.xlu1 %v1458_v4, %s1338_s25  ;;  %428 = vrot.lane.b32.xlu0 %v1441_v2, %s1338_s25 }
  0x4a   : > { %454 = vrot.lane.b32.xlu1 %v1439_v1, %s1339_s26  ;;  %452 = vrot.lane.b32.xlu0 %v1449_v3, %s1339_s26 }
  0x4e   : > { %478 = vrot.lane.b32.xlu1 %v1458_v4, %s1340_s27  ;;  %476 = vrot.lane.b32.xlu0 %v1441_v2, %s1340_s27 }
  0x52   : > { %426 = vrot.lane.b32.xlu1 %v1462_v5, %s1338_s25  ;;  %402 = vrot.lane.b32.xlu0 %v1441_v2, %s1337_s24 }
  0x56   : > { %474 = vrot.lane.b32.xlu1 %v1462_v5, %s1340_s27  ;;  %450 = vrot.lane.b32.xlu0 %v1441_v2, %s1339_s26 }
  0x5a   : > { %336 = vrot.lane.b32.xlu1 %v1439_v1, %s1334_s21  ;;  %312 = vrot.lane.b32.xlu0 %v1496_v7, %s1333_s20 }
  0x5e   : > { %384 = vrot.lane.b32.xlu1 %v1439_v1, %s1336_s23  ;;  %360 = vrot.lane.b32.xlu0 %v1496_v7, %s1335_s22 }
  0x62   : > { %502 = vrot.lane.b32.xlu1 %v1439_v1, %s1341_s28  ;;  %500 = vrot.lane.b32.xlu0 %v1449_v3, %s1341_s28 }
  0x66   : > { %526 = vrot.lane.b32.xlu1 %v1458_v4, %s1342_s29  ;;  %524 = vrot.lane.b32.xlu0 %v1441_v2, %s1342_s29 }
  0x6a   : > { %550 = vrot.lane.b32.xlu1 %v1439_v1, %s1343_s30  ;;  %548 = vrot.lane.b32.xlu0 %v1449_v3, %s1343_s30 }
  0x6e   : > { %574 = vrot.lane.b32.xlu1 %v1458_v4, %s1344_s3  ;;  %572 = vrot.lane.b32.xlu0 %v1441_v2, %s1344_s3 }
  0x72   : > { %522 = vrot.lane.b32.xlu1 %v1462_v5, %s1342_s29  ;;  %498 = vrot.lane.b32.xlu0 %v1441_v2, %s1341_s28 }
  0x76   : > { %570 = vrot.lane.b32.xlu1 %v1462_v5, %s1344_s3  ;;  %546 = vrot.lane.b32.xlu0 %v1441_v2, %s1343_s30 }
  0x7a   : > { %432 = vrot.lane.b32.xlu1 %v1439_v1, %s1338_s25  ;;  %408 = vrot.lane.b32.xlu0 %v1496_v7, %s1337_s24  ;;  %s1251_s25 = smul.u32 96, %s1853_s9 }
  0x7e   : > { %480 = vrot.lane.b32.xlu1 %v1439_v1, %s1340_s27  ;;  %456 = vrot.lane.b32.xlu0 %v1496_v7, %s1339_s26 }
  0x82   : > { %598 = vrot.lane.b32.xlu1 %v1439_v1, %s1345_s4  ;;  %596 = vrot.lane.b32.xlu0 %v1449_v3, %s1345_s4 }
  0x84   : > { %v1569_v8 = vpop.permute.xlu1 %262  ;;  %v237_v9 = vpop.permute.xlu0 %236 }
  0x86   : > { %622 = vrot.lane.b32.xlu1 %v1458_v4, %s1346_s5  ;;  %620 = vrot.lane.b32.xlu0 %v1441_v2, %s1346_s5 }
  0x88   : > { %v261_v10 = vpop.permute.xlu1 %260  ;;  %v285_v11 = vpop.permute.xlu0 %284 }
  0x89   : > { %v268_v12 = vsel %vm266_vm0, %v261_v10, %v1569_v8 }
  0x8a   : > { %274 = vst [vmem:[#allocation2 + $0x20] sm:$0xf] %v268_v12  ;;  %646 = vrot.lane.b32.xlu1 %v1439_v1, %s1347_s6  ;;  %644 = vrot.lane.b32.xlu0 %v1449_v3, %s1347_s6 }
  0x8c   : > { %v1581_v13 = vpop.permute.xlu1 %286  ;;  %v1583_v14 = vpop.permute.xlu0 %238 }
  0x8d   : > { %v292_v15 = vsel %vm290_vm1, %v285_v11, %v1581_v13  ;;  %v244_v16 = vsel %vm242_vm2, %v237_v9, %v1583_v14 }
  0x8e   : > { %298 = vst [vmem:[#allocation2 + $0x20] sm:$0xf0] %v292_v15  ;;  %250 = vst [vmem:[#allocation2 + $0x8] sm:$0xf0] %v244_v16  ;;  %670 = vrot.lane.b32.xlu1 %v1458_v4, %s1348_s7  ;;  %668 = vrot.lane.b32.xlu0 %v1441_v2, %s1348_s7 }
  0x90   : > { %v259_v17 = vpop.permute.xlu1 %258  ;;  %v235_v18 = vpop.permute.xlu0 %234 }
  0x91   : > { %v267_v19 = vsel %vm266_vm0, %v259_v17, %v261_v10  ;;  %v243_v20 = vsel %vm242_vm2, %v235_v18, %v237_v9  ;;  %v1693_v17 = vld [vmem:[%s1846_s1] sm:$0xff] }
  0x92   : > { %273 = vst [vmem:[#allocation2 + $0x18] sm:$0xf] %v267_v19  ;;  %249 = vst [vmem:[#allocation2] sm:$0xf0] %v243_v20  ;;  %618 = vrot.lane.b32.xlu1 %v1462_v5, %s1346_s5  ;;  %594 = vrot.lane.b32.xlu0 %v1441_v2, %s1345_s4 }
  0x93   : > { %1197 = vmatprep.mubr.msk.f32.mxu1 %vm434_vm8, %v1693_v17 }
  0x94   : > { %v309_v21 = vpop.permute.xlu1 %308  ;;  %v283_v22 = vpop.permute.xlu0 %282 }
  0x95   : > { %v291_v23 = vsel %vm290_vm1, %v283_v22, %v285_v11  ;;  %v809_v24 = vld [vmem:[#allocation2 + $0x8] sm:$0xff]  ;;  %v812_v25 = vld [vmem:[#allocation2 + $0x20] sm:$0xff] }
  0x96   : > { %297 = vst [vmem:[#allocation2 + $0x18] sm:$0xf0] %v291_v23  ;;  %666 = vrot.lane.b32.xlu1 %v1462_v5, %s1348_s7  ;;  %642 = vrot.lane.b32.xlu0 %v1441_v2, %s1347_s6  ;;  %v1203_v26 = vpack.c.bf16 %v812_v25, %v809_v24 }
  0x98   : > { %v333_v27 = vpop.permute.xlu1 %332  ;;  %v1604_v28 = vpop.permute.xlu0 %310  ;;  %1204 = vmatprep.subr.bf16.mxu0 %v1203_v26 }
  0x99   : > { %v316_v29 = vsel %vm314_vm3, %v309_v21, %v1604_v28  ;;  %v808_v33 = vld [vmem:[#allocation2] sm:$0xff] }
  0x9a   : > { %322 = vst [vmem:[#allocation2 + $0x38] sm:$0xf] %v316_v29  ;;  %528 = vrot.lane.b32.xlu1 %v1439_v1, %s1342_s29  ;;  %504 = vrot.lane.b32.xlu0 %v1496_v7, %s1341_s28  ;;  %s179_s28 = scalar_lea.vmem %s1847_s2, %s1251_s25 }
  0x9c   : > { %v357_v30 = vpop.permute.xlu1 %356  ;;  %v1612_v31 = vpop.permute.xlu0 %334 }
  0x9d   : > { %v340_v32 = vsel %vm338_vm4, %v333_v27, %v1612_v31  ;;  %v811_v34 = vld [vmem:[#allocation2 + $0x18] sm:$0xff] }
  0x9e   : > { %346 = vst [vmem:[#allocation2 + $0x38] sm:$0xf0] %v340_v32  ;;  %576 = vrot.lane.b32.xlu1 %v1439_v1, %s1344_s3  ;;  %552 = vrot.lane.b32.xlu0 %v1496_v7, %s1343_s30  ;;  %v1205_v35 = vpack.c.bf16 %v811_v34, %v808_v33 }
  0xa0   : > { %v381_v36 = vpop.permute.xlu1 %380  ;;  %v1620_v37 = vpop.permute.xlu0 %358  ;;  %1206 = vmatpush1.bf16.msra.mxu0 %v1205_v35 }
  0xa1   : > { %v364_v38 = vsel %vm362_vm5, %v357_v30, %v1620_v37 }
  0xa2   : > { %370 = vst [vmem:[#allocation2 + $0x50] sm:$0xf] %v364_v38  ;;  %694 = vrot.lane.b32.xlu1 %v1439_v1, %s1349_s8  ;;  %692 = vrot.lane.b32.xlu0 %v1449_v3, %s1349_s8 }
  0xa4   : > { %v307_v39 = vpop.permute.xlu1 %306  ;;  %v1628_v40 = vpop.permute.xlu0 %382 }
  0xa5   : > { %v315_v41 = vsel %vm314_vm3, %v307_v39, %v309_v21  ;;  %v388_v42 = vsel %vm386_vm6, %v381_v36, %v1628_v40  ;;  %v815_v51 = vld [vmem:[#allocation2 + $0x38] sm:$0xff] }
  0xa6   : > { %321 = vst [vmem:[#allocation2 + $0x30] sm:$0xf] %v315_v41  ;;  %394 = vst [vmem:[#allocation2 + $0x50] sm:$0xf0] %v388_v42  ;;  %718 = vrot.lane.b32.xlu1 %v1458_v4, %s1350_s13  ;;  %716 = vrot.lane.b32.xlu0 %v1441_v2, %s1350_s13 }
  0xa8   : > { %v355_v43 = vpop.permute.xlu1 %354  ;;  %v331_v44 = vpop.permute.xlu0 %330 }
  0xa9   : > { %v363_v45 = vsel %vm362_vm5, %v355_v43, %v357_v30  ;;  %v339_v46 = vsel %vm338_vm4, %v331_v44, %v333_v27 }
  0xaa   : > { %369 = vst [vmem:[#allocation2 + $0x48] sm:$0xf] %v363_v45  ;;  %345 = vst [vmem:[#allocation2 + $0x30] sm:$0xf0] %v339_v46  ;;  %742 = vrot.lane.b32.xlu1 %v1439_v1, %s1351_s14  ;;  %740 = vrot.lane.b32.xlu0 %v1449_v3, %s1351_s14 }
  0xac   : > { %v241_v47 = vpop.permute.xlu1 %240  ;;  %v379_v48 = vpop.permute.xlu0 %378 }
  0xad   : > { %v245_v49 = vsel %vm242_vm2, %v1583_v14, %v241_v47  ;;  %v387_v50 = vsel %vm386_vm6, %v379_v48, %v381_v36  ;;  %v818_v52 = vld [vmem:[#allocation2 + $0x50] sm:$0xff]  ;;  %vm674_vm2 = vcmask 523264  }
  0xae   : > { %251 = vst [vmem:[#allocation2 + $0x10] sm:$0xf0] %v245_v49  ;;  %393 = vst [vmem:[#allocation2 + $0x48] sm:$0xf0] %v387_v50  ;;  %766 = vrot.lane.b32.xlu1 %v1458_v4, %s1352_s15  ;;  %764 = vrot.lane.b32.xlu0 %v1441_v2, %s1352_s15  ;;  %v1207_v53 = vpack.c.bf16 %v818_v52, %v815_v51 }
  0xb0   : > { %v289_v54 = vpop.permute.xlu1 %288  ;;  %v265_v55 = vpop.permute.xlu0 %264  ;;  %1208 = vmatprep.subr.bf16.mxu0 %v1207_v53 }
  0xb1   : > { %v293_v56 = vsel %vm290_vm1, %v1581_v13, %v289_v54  ;;  %v269_v57 = vsel %vm266_vm0, %v1569_v8, %v265_v55  ;;  %v814_v61 = vld [vmem:[#allocation2 + $0x30] sm:$0xff]  ;;  %vm626_vm0 = vcmask 539648   ;;  %vm650_vm1 = vcmask 531456  }
  0xb2   : > { %299 = vst [vmem:[#allocation2 + $0x28] sm:$0xf0] %v293_v56  ;;  %275 = vst [vmem:[#allocation2 + $0x28] sm:$0xf] %v269_v57  ;;  %714 = vrot.lane.b32.xlu1 %v1462_v5, %s1350_s13  ;;  %690 = vrot.lane.b32.xlu0 %v1441_v2, %s1349_s8 }
  0xb4   : > { %v1658_v58 = vpop.permute.xlu1 %406  ;;  %v405_v59 = vpop.permute.xlu0 %404 }
  0xb5   : > { %v412_v60 = vsel %vm410_vm7, %v405_v59, %v1658_v58  ;;  %v817_v62 = vld [vmem:[#allocation2 + $0x48] sm:$0xff]  ;;  %v810_v9 = vld [vmem:[#allocation2 + $0x10] sm:$0xff] }
  0xb6   : > { %418 = vst [vmem:[#allocation2 + $0x68] sm:$0xf] %v412_v60  ;;  %762 = vrot.lane.b32.xlu1 %v1462_v5, %s1352_s15  ;;  %738 = vrot.lane.b32.xlu0 %v1441_v2, %s1351_s14  ;;  %v1209_v63 = vpack.c.bf16 %v817_v62, %v814_v61 }
  0xb8   : > { %v1666_v4 = vpop.permute.xlu1 %430  ;;  %v429_v6 = vpop.permute.xlu0 %428  ;;  %1210 = vmatpush1.bf16.msra.mxu0 %v1209_v63 }
  0xb9   : > { %v436_v8 = vsel %vm434_vm8, %v429_v6, %v1666_v4  ;;  %v813_v10 = vld [vmem:[#allocation2 + $0x28] sm:$0xff] }
  0xba   : > { %442 = vst [vmem:[#allocation2 + $0x68] sm:$0xf0] %v436_v8  ;;  %624 = vrot.lane.b32.xlu1 %v1439_v1, %s1346_s5  ;;  %600 = vrot.lane.b32.xlu0 %v1496_v7, %s1345_s4  ;;  %v1227_v5 = vpack.c.bf16 %v813_v10, %v810_v9 }
  0xbc   : > { %v1674_v11 = vpop.permute.xlu1 %454  ;;  %v453_v12 = vpop.permute.xlu0 %452  ;;  %1228 = vmatprep.subr.bf16.mxu1 %v1227_v5 }
  0xbd   : > { %v460_v13 = vsel %vm458_vm9, %v453_v12, %v1674_v11  ;;  %1230 = vmatpush3.bf16.msra.mxu1 %v1227_v5 }
  0xbe   : > { %466 = vst [vmem:[#allocation2 + $0x80] sm:$0xf] %v460_v13  ;;  %672 = vrot.lane.b32.xlu1 %v1439_v1, %s1348_s7  ;;  %648 = vrot.lane.b32.xlu0 %v1496_v7, %s1347_s6 }
  0xc0   : > { %v1682_v14 = vpop.permute.xlu1 %478  ;;  %v477_v15 = vpop.permute.xlu0 %476 }
  0xc1   : > { %v484_v16 = vsel %vm482_vm10, %v477_v15, %v1682_v14  ;;  %v821_v25 = vld [vmem:[#allocation2 + $0x68] sm:$0xff] }
  0xc2   : > { %490 = vst [vmem:[#allocation2 + $0x80] sm:$0xf0] %v484_v16  ;;  %790 = vrot.lane.b32.xlu1 %v1439_v1, %s1353_s16  ;;  %788 = vrot.lane.b32.xlu0 %v1449_v3, %s1353_s16 }
  0xc4   : > { %v427_v18 = vpop.permute.xlu1 %426  ;;  %v403_v19 = vpop.permute.xlu0 %402 }
  0xc5   : > { %v435_v20 = vsel %vm434_vm8, %v427_v18, %v429_v6  ;;  %v411_v21 = vsel %vm410_vm7, %v403_v19, %v405_v59 }
  0xc6   : > { %441 = vst [vmem:[#allocation2 + $0x60] sm:$0xf0] %v435_v20  ;;  %417 = vst [vmem:[#allocation2 + $0x60] sm:$0xf] %v411_v21  ;;  %696 = vrot.lane.b32.xlu1 %v1496_v7, %s1349_s8  ;;  %786 = vrot.lane.b32.xlu0 %v1441_v2, %s1353_s16 }
  0xc8   : > { %v475_v3 = vpop.permute.xlu1 %474  ;;  %v451_v22 = vpop.permute.xlu0 %450 }
  0xc9   : > { %v483_v23 = vsel %vm482_vm10, %v475_v3, %v477_v15  ;;  %v459_v24 = vsel %vm458_vm9, %v451_v22, %v453_v12  ;;  %v824_v26 = vld [vmem:[#allocation2 + $0x80] sm:$0xff] }
  0xca   : > { %489 = vst [vmem:[#allocation2 + $0x78] sm:$0xf0] %v483_v23  ;;  %465 = vst [vmem:[#allocation2 + $0x78] sm:$0xf] %v459_v24  ;;  %744 = vrot.lane.b32.xlu1 %v1496_v7, %s1351_s14  ;;  %720 = vrot.lane.b32.xlu0 %v1439_v1, %s1350_s13  ;;  %v1211_v27 = vpack.c.bf16 %v824_v26, %v821_v25 }
  0xcc   : > { %v337_v29 = vpop.permute.xlu1 %336  ;;  %v313_v30 = vpop.permute.xlu0 %312  ;;  %1212 = vmatprep.subr.bf16.mxu0 %v1211_v27 }
  0xcd   : > { %v341_v2 = vsel %vm338_vm4, %v1612_v31, %v337_v29  ;;  %v317_v32 = vsel %vm314_vm3, %v1604_v28, %v313_v30  ;;  %v820_v31 = vld [vmem:[#allocation2 + $0x60] sm:$0xff]  ;;  %vm698_vm3 = vcmask 392192   ;;  %vm722_vm4 = vcmask 384000  }
  0xce   : > { %347 = vst [vmem:[#allocation2 + $0x40] sm:$0xf0] %v341_v2  ;;  %323 = vst [vmem:[#allocation2 + $0x40] sm:$0xf] %v317_v32  ;;  %792 = vrot.lane.b32.xlu1 %v1496_v7, %s1353_s16  ;;  %768 = vrot.lane.b32.xlu0 %v1439_v1, %s1352_s15 }
  0xd0   : > { %v385_v33 = vpop.permute.xlu1 %384  ;;  %v361_v34 = vpop.permute.xlu0 %360 }
  0xd1   : > { %v389_v35 = vsel %vm386_vm6, %v1628_v40, %v385_v33  ;;  %v365_v36 = vsel %vm362_vm5, %v1620_v37, %v361_v34  ;;  %v823_v38 = vld [vmem:[#allocation2 + $0x78] sm:$0xff]  ;;  %vm746_vm5 = vcmask 375808   ;;  %vm770_vm6 = vcmask 367616  }
  0xd2   : > { %395 = vst [vmem:[#allocation2 + $0x58] sm:$0xf0] %v389_v35  ;;  %371 = vst [vmem:[#allocation2 + $0x58] sm:$0xf] %v365_v36  ;;  %v1213_v28 = vpack.c.bf16 %v823_v38, %v820_v31 }
  0xd4   : > { %v1721_v39 = vpop.permute.xlu1 %502  ;;  %v501_v7 = vpop.permute.xlu0 %500  ;;  %1214 = vmatpush1.bf16.msra.mxu0 %v1213_v28 }
  0xd5   : > { %v508_v1 = vsel %vm506_vm11, %v501_v7, %v1721_v39  ;;  %v816_v42 = vld [vmem:[#allocation2 + $0x40] sm:$0xff] }
  0xd6   : > { %514 = vst [vmem:[#allocation2 + $0x98] sm:$0xf] %v508_v1 }
  0xd8   : > { %v1725_v41 = vpop.permute.xlu1 %526  ;;  %v525_v40 = vpop.permute.xlu0 %524 }
  0xd9   : > { %v532_v37 = vsel %vm530_vm12, %v525_v40, %v1725_v41  ;;  %v819_v43 = vld [vmem:[#allocation2 + $0x58] sm:$0xff] }
  0xda   : > { %538 = vst [vmem:[#allocation2 + $0x98] sm:$0xf0] %v532_v37  ;;  %v1231_v44 = vpack.c.bf16 %v819_v43, %v816_v42 }
  0xdc   : > { %v1729_v45 = vpop.permute.xlu1 %550  ;;  %v549_v46 = vpop.permute.xlu0 %548  ;;  %1232 = vmatprep.subr.bf16.mxu1 %v1231_v44 }
  0xdd   : > { %v556_v47 = vsel %vm554_vm13, %v549_v46, %v1729_v45  ;;  %1234 = vmatpush3.bf16.msra.mxu1 %v1231_v44 }
  0xde   : > { %562 = vst [vmem:[#allocation2 + $0xb0] sm:$0xf] %v556_v47 }
  0xe0   : > { %v1733_v48 = vpop.permute.xlu1 %574  ;;  %v573_v49 = vpop.permute.xlu0 %572 }
  0xe1   : > { %v580_v50 = vsel %vm578_vm14, %v573_v49, %v1733_v48  ;;  %v827_v60 = vld [vmem:[#allocation2 + $0x98] sm:$0xff] }
  0xe2   : > { %586 = vst [vmem:[#allocation2 + $0xb0] sm:$0xf0] %v580_v50 }
  0xe4   : > { %v523_v51 = vpop.permute.xlu1 %522  ;;  %v499_v52 = vpop.permute.xlu0 %498 }
  0xe5   : > { %v531_v53 = vsel %vm530_vm12, %v523_v51, %v525_v40  ;;  %v507_v54 = vsel %vm506_vm11, %v499_v52, %v501_v7 }
  0xe6   : > { %537 = vst [vmem:[#allocation2 + $0x90] sm:$0xf0] %v531_v53  ;;  %513 = vst [vmem:[#allocation2 + $0x90] sm:$0xf] %v507_v54 }
  0xe8   : > { %v571_v55 = vpop.permute.xlu1 %570  ;;  %v547_v56 = vpop.permute.xlu0 %546 }
  0xe9   : > { %v579_v57 = vsel %vm578_vm14, %v571_v55, %v573_v49  ;;  %v555_v59 = vsel %vm554_vm13, %v547_v56, %v549_v46  ;;  %v830_v61 = vld [vmem:[#allocation2 + $0xb0] sm:$0xff] }
  0xea   : > { %585 = vst [vmem:[#allocation2 + $0xa8] sm:$0xf0] %v579_v57  ;;  %561 = vst [vmem:[#allocation2 + $0xa8] sm:$0xf] %v555_v59  ;;  %v1215_v62 = vpack.c.bf16 %v830_v61, %v827_v60 }
  0xec   : > { %v433_v63 = vpop.permute.xlu1 %432  ;;  %v409_v6 = vpop.permute.xlu0 %408  ;;  %1216 = vmatprep.subr.bf16.mxu0 %v1215_v62 }
  0xed   : > { %v437_v8 = vsel %vm434_vm8, %v1666_v4, %v433_v63  ;;  %v413_v9 = vsel %vm410_vm7, %v1658_v58, %v409_v6  ;;  %v826_v15 = vld [vmem:[#allocation2 + $0x90] sm:$0xff]  ;;  %vm794_vm7 = vcmask 359424  }
  0xee   : > { %443 = vst [vmem:[#allocation2 + $0x70] sm:$0xf0] %v437_v8  ;;  %419 = vst [vmem:[#allocation2 + $0x70] sm:$0xf] %v413_v9 }
  0xf0   : > { %v481_v10 = vpop.permute.xlu1 %480  ;;  %v457_v5 = vpop.permute.xlu0 %456 }
  0xf1   : > { %v485_v12 = vsel %vm482_vm10, %v1682_v14, %v481_v10  ;;  %v461_v13 = vsel %vm458_vm9, %v1674_v11, %v457_v5  ;;  %v829_v16 = vld [vmem:[#allocation2 + $0xa8] sm:$0xff] }
  0xf2   : > { %491 = vst [vmem:[#allocation2 + $0x88] sm:$0xf0] %v485_v12  ;;  %467 = vst [vmem:[#allocation2 + $0x88] sm:$0xf] %v461_v13  ;;  %v1217_v18 = vpack.c.bf16 %v829_v16, %v826_v15 }
  0xf4   : > { %v1749_v4 = vpop.permute.xlu1 %598  ;;  %v597_v19 = vpop.permute.xlu0 %596  ;;  %1218 = vmatpush1.bf16.msra.mxu0 %v1217_v18 }
  0xf5   : > { %v604_v58 = vsel %vm602_vm15, %v597_v19, %v1749_v4  ;;  %v822_v21 = vld [vmem:[#allocation2 + $0x70] sm:$0xff] }
  0xf6   : > { %610 = vst [vmem:[#allocation2 + $0xc8] sm:$0xf] %v604_v58 }
  0xf8   : > { %v1753_v20 = vpop.permute.xlu1 %622  ;;  %v621_v14 = vpop.permute.xlu0 %620 }
  0xf9   : > { %v628_v11 = vsel %vm626_vm0, %v621_v14, %v1753_v20  ;;  %v825_v3 = vld [vmem:[#allocation2 + $0x88] sm:$0xff] }
  0xfa   : > { %634 = vst [vmem:[#allocation2 + $0xc8] sm:$0xf0] %v628_v11  ;;  %v1235_v22 = vpack.c.bf16 %v825_v3, %v822_v21 }
  0xfc   : > { %v1757_v23 = vpop.permute.xlu1 %646  ;;  %v645_v24 = vpop.permute.xlu0 %644  ;;  %1236 = vmatprep.subr.bf16.mxu1 %v1235_v22 }
  0xfd   : > { %v652_v25 = vsel %vm650_vm1, %v645_v24, %v1757_v23  ;;  %1238 = vmatpush3.bf16.msra.mxu1 %v1235_v22 }
  0xfe   : > { %658 = vst [vmem:[#allocation2 + $0xe0] sm:$0xf] %v652_v25 }
 0x100   : > { %v1761_v26 = vpop.permute.xlu1 %670  ;;  %v669_v27 = vpop.permute.xlu0 %668 }
 0x101   : > { %v676_v29 = vsel %vm674_vm2, %v669_v27, %v1761_v26  ;;  %v833_v38 = vld [vmem:[#allocation2 + $0xc8] sm:$0xff] }
 0x102   : > { %682 = vst [vmem:[#allocation2 + $0xe0] sm:$0xf0] %v676_v29 }
 0x104   : > { %v619_v30 = vpop.permute.xlu1 %618  ;;  %v595_v2 = vpop.permute.xlu0 %594 }
 0x105   : > { %v627_v32 = vsel %vm626_vm0, %v619_v30, %v621_v14  ;;  %v603_v33 = vsel %vm602_vm15, %v595_v2, %v597_v19 }
 0x106   : > { %633 = vst [vmem:[#allocation2 + $0xc0] sm:$0xf0] %v627_v32  ;;  %609 = vst [vmem:[#allocation2 + $0xc0] sm:$0xf] %v603_v33 }
 0x108   : > { %v667_v34 = vpop.permute.xlu1 %666  ;;  %v643_v35 = vpop.permute.xlu0 %642 }
 0x109   : > { %v675_v36 = vsel %vm674_vm2, %v667_v34, %v669_v27  ;;  %v651_v31 = vsel %vm650_vm1, %v643_v35, %v645_v24  ;;  %v836_v28 = vld [vmem:[#allocation2 + $0xe0] sm:$0xff] }
 0x10a   : > { %681 = vst [vmem:[#allocation2 + $0xd8] sm:$0xf0] %v675_v36  ;;  %657 = vst [vmem:[#allocation2 + $0xd8] sm:$0xf] %v651_v31  ;;  %v1219_v7 = vpack.c.bf16 %v836_v28, %v833_v38 }
 0x10c   : > { %v529_v1 = vpop.permute.xlu1 %528  ;;  %v505_v40 = vpop.permute.xlu0 %504  ;;  %1220 = vmatprep.subr.bf16.mxu0 %v1219_v7 }
 0x10d   : > { %v533_v37 = vsel %vm530_vm12, %v1725_v41, %v529_v1  ;;  %v509_v42 = vsel %vm506_vm11, %v1721_v39, %v505_v40  ;;  %v832_v49 = vld [vmem:[#allocation2 + $0xc0] sm:$0xff] }
 0x10e   : > { %539 = vst [vmem:[#allocation2 + $0xa0] sm:$0xf0] %v533_v37  ;;  %515 = vst [vmem:[#allocation2 + $0xa0] sm:$0xf] %v509_v42 }
 0x110   : > { %v577_v43 = vpop.permute.xlu1 %576  ;;  %v553_v44 = vpop.permute.xlu0 %552 }
 0x111   : > { %v581_v46 = vsel %vm578_vm14, %v1733_v48, %v577_v43  ;;  %v557_v47 = vsel %vm554_vm13, %v1729_v45, %v553_v44  ;;  %v835_v50 = vld [vmem:[#allocation2 + $0xd8] sm:$0xff] }
 0x112   : > { %587 = vst [vmem:[#allocation2 + $0xb8] sm:$0xf0] %v581_v46  ;;  %563 = vst [vmem:[#allocation2 + $0xb8] sm:$0xf] %v557_v47  ;;  %v1221_v51 = vpack.c.bf16 %v835_v50, %v832_v49  ;;  %v805_v46 = vld [vmem:[%s1846_s1 + $0x8] sm:$0xff]  ;;  %v806_v47 = vld [vmem:[%s1846_s1 + $0x10] sm:$0xff] }
 0x114   : > { %v1777_v41 = vpop.permute.xlu1 %694  ;;  %v693_v52 = vpop.permute.xlu0 %692  ;;  %1222 = vmatpush1.bf16.msra.mxu0 %v1221_v51 }
 0x115   : > { %v700_v39 = vsel %vm698_vm3, %v693_v52, %v1777_v41  ;;  %v828_v54 = vld [vmem:[#allocation2 + $0xa0] sm:$0xff] }
 0x116   : > { %706 = vst [vmem:[#allocation2 + $0xf8] sm:$0xf] %v700_v39 }
 0x118   : > { %v1781_v53 = vpop.permute.xlu1 %718  ;;  %v717_v48 = vpop.permute.xlu0 %716 }
 0x119   : > { %v724_v45 = vsel %vm722_vm4, %v717_v48, %v1781_v53  ;;  %v831_v55 = vld [vmem:[#allocation2 + $0xb8] sm:$0xff] }
 0x11a   : > { %730 = vst [vmem:[#allocation2 + $0xf8] sm:$0xf0] %v724_v45  ;;  %v1239_v56 = vpack.c.bf16 %v831_v55, %v828_v54 }
 0x11c   : > { %v743_v57 = vpop.permute.xlu1 %742  ;;  %v741_v59 = vpop.permute.xlu0 %740  ;;  %1240 = vmatprep.subr.bf16.mxu1 %v1239_v56 }
 0x11d   : > { %v748_v60 = vsel %vm746_vm5, %v741_v59, %v743_v57  ;;  %1242 = vmatpush3.bf16.msra.mxu1 %v1239_v56 }
 0x11e   : > { %754 = vst [vmem:[#allocation2 + $0x110] sm:$0xf] %v748_v60 }
 0x120   : > { %v1786_v61 = vpop.permute.xlu1 %766  ;;  %v765_v62 = vpop.permute.xlu0 %764 }
 0x121   : > { %v772_v63 = vsel %vm770_vm6, %v765_v62, %v1786_v61  ;;  %v839_v16 = vld [vmem:[#allocation2 + $0xf8] sm:$0xff] }
 0x122   : > { %778 = vst [vmem:[#allocation2 + $0x110] sm:$0xf0] %v772_v63 }
 0x124   : > { %v715_v6 = vpop.permute.xlu1 %714  ;;  %v691_v8 = vpop.permute.xlu0 %690 }
 0x125   : > { %v723_v9 = vsel %vm722_vm4, %v715_v6, %v717_v48  ;;  %v699_v10 = vsel %vm698_vm3, %v691_v8, %v693_v52 }
 0x126   : > { %729 = vst [vmem:[#allocation2 + $0xf0] sm:$0xf0] %v723_v9  ;;  %705 = vst [vmem:[#allocation2 + $0xf0] sm:$0xf] %v699_v10 }
 0x128   : > { %v763_v5 = vpop.permute.xlu1 %762  ;;  %v739_v12 = vpop.permute.xlu0 %738 }
 0x129   : > { %v771_v13 = vsel %vm770_vm6, %v763_v5, %v765_v62  ;;  %v747_v15 = vsel %vm746_vm5, %v739_v12, %v741_v59  ;;  %v842_v18 = vld [vmem:[#allocation2 + $0x110] sm:$0xff] }
 0x12a   : > { %777 = vst [vmem:[#allocation2 + $0x108] sm:$0xf0] %v771_v13  ;;  %753 = vst [vmem:[#allocation2 + $0x108] sm:$0xf] %v747_v15  ;;  %v1223_v19 = vpack.c.bf16 %v842_v18, %v839_v16 }
 0x12c   : > { %v625_v58 = vpop.permute.xlu1 %624  ;;  %v601_v14 = vpop.permute.xlu0 %600  ;;  %1224 = vmatprep.subr.bf16.mxu0 %v1223_v19 }
 0x12d   : > { %v629_v11 = vsel %vm626_vm0, %v1753_v20, %v625_v58  ;;  %v605_v21 = vsel %vm602_vm15, %v1749_v4, %v601_v14  ;;  %v838_v27 = vld [vmem:[#allocation2 + $0xf0] sm:$0xff] }
 0x12e   : > { %635 = vst [vmem:[#allocation2 + $0xd0] sm:$0xf0] %v629_v11  ;;  %611 = vst [vmem:[#allocation2 + $0xd0] sm:$0xf] %v605_v21 }
 0x130   : > { %v673_v3 = vpop.permute.xlu1 %672  ;;  %v649_v22 = vpop.permute.xlu0 %648 }
 0x131   : > { %v677_v24 = vsel %vm674_vm2, %v1761_v26, %v673_v3  ;;  %v653_v25 = vsel %vm650_vm1, %v1757_v23, %v649_v22  ;;  %v841_v29 = vld [vmem:[#allocation2 + $0x108] sm:$0xff] }
 0x132   : > { %683 = vst [vmem:[#allocation2 + $0xe8] sm:$0xf0] %v677_v24  ;;  %659 = vst [vmem:[#allocation2 + $0xe8] sm:$0xf] %v653_v25  ;;  %v1225_v30 = vpack.c.bf16 %v841_v29, %v838_v27 }
 0x134   : > { %v791_v20 = vpop.permute.xlu1 %790  ;;  %v789_v2 = vpop.permute.xlu0 %788  ;;  %1226 = vmatpush1.bf16.msra.mxu0 %v1225_v30 }
 0x135   : > { %v796_v4 = vsel %vm794_vm7, %v789_v2, %v791_v20  ;;  %v834_v23 = vld [vmem:[#allocation2 + $0xd0] sm:$0xff] }
 0x136   : > { %802 = vst [vmem:[#allocation2 + $0x128] sm:$0xf] %v796_v4 }
 0x138   : > { %v697_v32 = vpop.permute.xlu1 %696  ;;  %v787_v33 = vpop.permute.xlu0 %786 }
 0x139   : > { %v701_v26 = vsel %vm698_vm3, %v1777_v41, %v697_v32  ;;  %v795_v34 = vsel %vm794_vm7, %v787_v33, %v789_v2  ;;  %v837_v35 = vld [vmem:[#allocation2 + $0xe8] sm:$0xff] }
 0x13a   : > { %707 = vst [vmem:[#allocation2 + $0x100] sm:$0xf] %v701_v26  ;;  %801 = vst [vmem:[#allocation2 + $0x120] sm:$0xf] %v795_v34  ;;  %v1243_v36 = vpack.c.bf16 %v837_v35, %v834_v23 }
 0x13c   : > { %v745_v31 = vpop.permute.xlu1 %744  ;;  %v721_v38 = vpop.permute.xlu0 %720  ;;  %1244 = vmatprep.subr.bf16.mxu1 %v1243_v36 }
 0x13d   : > { %v749_v28 = vsel %vm746_vm5, %v743_v57, %v745_v31  ;;  %v725_v7 = vsel %vm722_vm4, %v1781_v53, %v721_v38  ;;  %1246 = vmatpush3.bf16.msra.mxu1 %v1243_v36  ;;  %v845_v1 = vld [vmem:[#allocation2 + $0x128] sm:$0xff] }
 0x13e   : > { %755 = vst [vmem:[#allocation2 + $0x118] sm:$0xf] %v749_v28  ;;  %731 = vst [vmem:[#allocation2 + $0x100] sm:$0xf0] %v725_v7  ;;  %883 = vmatprep.subr.mxu0 %v845_v1 }
 0x140   : > { %v793_v40 = vpop.permute.xlu1 %792  ;;  %v769_v37 = vpop.permute.xlu0 %768 }
 0x141   : > { %v797_v42 = vsel %vm794_vm7, %v791_v20, %v793_v40  ;;  %v773_v43 = vsel %vm770_vm6, %v1786_v61, %v769_v37  ;;  %v844_v44 = vld [vmem:[#allocation2 + $0x120] sm:$0xff] }
 0x142   : > { %803 = vst [vmem:[#allocation2 + $0x130] sm:$0xf] %v797_v42  ;;  %779 = vst [vmem:[#allocation2 + $0x118] sm:$0xf0] %v773_v43  ;;  %884 = vmatpush1.msra.mxu0 %v844_v44 }
 0x143   : > { %1143 = vmatmul.mubr.msk.f32.vlgmr.msra.gmra.mrb[0].mxu0 %vm434_vm8, %v1693_v17  ;;  %v807_v17 = vld [vmem:[%s1846_s1 + $0x18] sm:$0xff] }
 0x144   : > { %929 = vmatprep.mubr.f32.mxu0 %v1329_v0 }
 0x145   : > { %v840_v49 = vld [vmem:[#allocation2 + $0x100] sm:$0xff] }
 0x147   : > { %1144 = vmatmul.mubr.msk.f32.gmra.mrb[2].mxu0 %vm434_vm8, %v805_v46 }
 0x148   : > { %935 = vmatprep.mubr.f32.mxu0 %v1329_v0 }
 0x149   : > { %v843_v50 = vld [vmem:[#allocation2 + $0x118] sm:$0xff]  ;;  %v846_v41 = vld [vmem:[#allocation2 + $0x130] sm:$0xff] }
 0x14a   : > { %v1247_v51 = vpack.c.bf16 %v843_v50, %v840_v49 }
 0x14b   : > { %1145 = vmatmul.mubr.msk.f32.gmra.mrb[4].mxu0 %vm434_vm8, %v806_v47 }
 0x14c   : > { %1248 = vmatprep.subr.bf16.mxu1 %v1247_v51  ;;  %941 = vmatprep.mubr.f32.mxu0 %v1329_v0 }
 0x14d   : > { %1250 = vmatpush3.bf16.msra.mxu1 %v1247_v51 }
 0x14e   : > { %1195 = vmatprep.subr.mxu1 %v846_v41 }
 0x14f   : > { %1146 = vmatmul.mubr.msk.f32.gmra.mrb[6].mxu0 %vm434_vm8, %v807_v17 }
 0x151   : > { %1196 = vmatpush3.msra.mxu1 %v846_v41 }
 0x152   : > { %1198 = vmatmul.mubr.msk.f32.vlgmr.msra.gmra.mrb[0].mxu1 %vm434_vm8, %v805_v46 }
 0x153   : > { %1200 = vmatprep.mubr.msk.f32.mxu1 %vm434_vm8, %v806_v47 }
 0x156   : > { %1201 = vmatmul.mubr.msk.f32.gmra.mrb[2].mxu1 %vm434_vm8, %v807_v17 }
 0x216   : > { %v925_v0 = vpop.f32.mrb[0].mxu0 }
 0x217   : > { %1033 = vst [vmem:[%s179_s28] sm:$0xff] %v925_v0  ;;  %v927_v52 = vpop.f32.mrb[1].mxu0 }
 0x218   : > { %1034 = vst [vmem:[%s179_s28 + $0x8] sm:$0xff] %v927_v52 }
 0x21a   : > { %v931_v39 = vpop.f32.mrb[2].mxu0 }
 0x21b   : > { %1036 = vst [vmem:[%s179_s28 + $0x18] sm:$0xff] %v931_v39  ;;  %v933_v53 = vpop.f32.mrb[3].mxu0 }
 0x21c   : > { %1037 = vst [vmem:[%s179_s28 + $0x20] sm:$0xff] %v933_v53 }
 0x21e   : > { %v937_v48 = vpop.f32.mrb[4].mxu0 }
 0x21f   : > { %1039 = vst [vmem:[%s179_s28 + $0x30] sm:$0xff] %v937_v48  ;;  %v939_v45 = vpop.f32.mrb[5].mxu0 }
 0x220   : > { %1040 = vst [vmem:[%s179_s28 + $0x38] sm:$0xff] %v939_v45 }
 0x222   : > { %v943_v54 = vpop.f32.mrb[6].mxu0 }
 0x223   : > { %1042 = vst [vmem:[%s179_s28 + $0x48] sm:$0xff] %v943_v54  ;;  %v945_v55 = vpop.f32.mrb[7].mxu0 }
 0x224   : > { %1043 = vst [vmem:[%s179_s28 + $0x50] sm:$0xff] %v945_v55 }
 0x225   : > { %v1199_v56 = vpop.f32.mrb[0].mxu1 }
 0x226   : > { %1038 = vst [vmem:[%s179_s28 + $0x28] sm:$0xff] %v1199_v56  ;;  %v1014_v57 = vpop.f32.mrb[1].mxu1 }
 0x227   : > { %1035 = vst [vmem:[%s179_s28 + $0x10] sm:$0xff] %v1014_v57 }
 0x229   : > { %v1202_v59 = vpop.f32.mrb[2].mxu1 }
 0x22a   : > { %1044 = vst [vmem:[%s179_s28 + $0x58] sm:$0xff] %v1202_v59  ;;  %v1024_v60 = vpop.f32.mrb[3].mxu1 }
 0x22b   : > { %1041 = vst [vmem:[%s179_s28 + $0x40] sm:$0xff] %v1024_v60 }
 0x22c PF: > { %s12_s11 = sadd.s32 1, %s1327_s11   ;;  %s1848_s9 = smov %s1323_s10 }
 0x22d   : > { %p9_p5 = scmp.ge.s32.totalorder %s12_s11, 4   ;;  %s1849_s10 = smov %s1851_s12 }
 0x22f   :  { %11 = sbr.rel (!%p9_p5) target bundleno = 2 (0x2), region = 58 }

</bundles_post_ra>
